<compile_context>
chip_gen: v7x
topology: tpu7x:2x2x1
jax: 0.10.0
libtpu: 0.0.40
codegen_flags: <defaults>
</compile_context>

<pallas_src>
import functools
import math

import jax
import jax.numpy as jnp
from jax import lax
from jax.experimental import pallas as pl
from jax.experimental.pallas import tpu as pltpu


_MASK_BIAS = -1e30                     # large finite negative (NaN-safe)
_VMEM_LIMIT = 48 * 1024 * 1024         # above 16/32 MiB defaults, < v7x 64 MiB


def _default_q_tile():
    """128 on <=v5 (128-wide MXU), 256 on v6e/v7x (256-wide MXU passes)."""
    try:
        kind = jax.devices()[0].device_kind.lower()
    except Exception:
        return 128
    if any(v in kind for v in ("v2", "v3", "v4", "v5")):
        return 128
    return 256


def _layernorm(v, gamma, beta, eps=1e-5):
    # Two-pass (mean, mean of centered squares) -> matches PyTorch numerics.
    # Only computed once per token now that it is hoisted out of the kv loop.
    mu = jnp.mean(v, axis=-1, keepdims=True)
    d = v - mu
    var = jnp.mean(d * d, axis=-1, keepdims=True)
    return gamma * (d * lax.rsqrt(var + eps)) + beta


def _gelu_tanh(v):
    c = math.sqrt(2.0 / math.pi)
    return 0.5 * v * (1.0 + jnp.tanh(c * (v + 0.044715 * v * v * v)))


# ---------------------------------------------------------------------------
# Kernel 1: LN1 + full-width Q/K/V projections (once per token), per-head out.
# ---------------------------------------------------------------------------
def qkv_proj_kernel(x_ref, wq_ref, wk_ref, wv_ref, g1_ref, s1_ref,
                    q_ref, k_ref, v_ref, *, num_heads, head_dim, scale):
    x = x_ref[0]                                               # [tt, E] f32
    xn = _layernorm(x, g1_ref[...], s1_ref[...]).astype(jnp.bfloat16)

    # Full-width [tt,E] x [E,E] matmuls (MXU output lanes fully used).
    q = jnp.dot(xn, wq_ref[...], preferred_element_type=jnp.float32) * scale
    k = jnp.dot(xn, wk_ref[...], preferred_element_type=jnp.float32)
    v = jnp.dot(xn, wv_ref[...], preferred_element_type=jnp.float32)
    q = q.astype(jnp.bfloat16)
    k = k.astype(jnp.bfloat16)
    v = v.astype(jnp.bfloat16)

    # Head split via static lane slices, done once here (not per kv step).
    for h in range(num_heads):
        lo = h * head_dim
        hi = lo + head_dim
        q_ref[0, h] = q[:, lo:hi]
        k_ref[0, h] = k[:, lo:hi]
        v_ref[0, h] = v[:, lo:hi]


# ---------------------------------------------------------------------------
# Kernel 2: causal flash attention, grid (B, H, n_q, n_kv).
# ---------------------------------------------------------------------------
def flash_attn_kernel(q_ref, k_ref, v_ref, o_ref, m_scr, l_scr, acc_scr,
                      *, block_q, block_kv):
    qi = pl.program_id(2)
    ki = pl.program_id(3)

    @pl.when(ki == 0)
    def _init():
        m_scr[...] = jnp.full_like(m_scr, -jnp.inf)
        l_scr[...] = jnp.zeros_like(l_scr)
        acc_scr[...] = jnp.zeros_like(acc_scr)

    def _step(with_mask):
        q = q_ref[0, 0]                                        # [tq, Dh] bf16
        k = k_ref[0, 0]                                        # [tkv, Dh] bf16
        v = v_ref[0, 0]
        s = lax.dot_general(q, k, (((1,), (1,)), ((), ())),
                            preferred_element_type=jnp.float32)  # [tq, tkv]
        if with_mask:   # only the diagonal-straddling tile pays for the mask
            row = qi * block_q + lax.broadcasted_iota(jnp.int32, s.shape, 0)
            col = ki * block_kv + lax.broadcasted_iota(jnp.int32, s.shape, 1)
            s = jnp.where(col > row, jnp.float32(_MASK_BIAS), s)
        m_prev = m_scr[...]
        m_new = jnp.maximum(m_prev, jnp.max(s, axis=-1, keepdims=True))
        alpha = jnp.exp(m_prev - m_new)
        # TODO(synk): bf16 exp on v6e/v7x to cut EUP/VPU pressure; f32 kept
        #             here so the same kernel is valid on v5e.
        p = jnp.exp(s - m_new)
        l_scr[...] = alpha * l_scr[...] + jnp.sum(p, axis=-1, keepdims=True)
        acc_scr[...] = alpha * acc_scr[...] + jnp.dot(
            p.astype(v.dtype), v, preferred_element_type=jnp.float32)
        m_scr[...] = m_new

    @pl.when(ki == qi)          # diagonal tile: masked path
    def _diag():
        _step(True)

    @pl.when(ki < qi)           # strictly below diagonal: unmasked path
    def _below():
        _step(False)

    @pl.when(ki == pl.num_programs(3) - 1)
    def _finalize():
        inv = pl.reciprocal(l_scr[...], approx=True)
        o_ref[0, 0] = (acc_scr[...] * inv).astype(o_ref.dtype)


# ---------------------------------------------------------------------------
# Kernel 3: out-proj + residual 1 + LN2 + FFN streamed over 4E + residual 2.
# ---------------------------------------------------------------------------
def ffn_block_kernel(x_ref, ctx_ref, wo_ref, bo_ref, g2_ref, s2_ref,
                     w1_ref, b1_ref, w2_ref, b2_ref, o_ref,
                     x1_scr, xn2_scr, h2_scr, *, num_heads):
    fi = pl.program_id(2)

    @pl.when(fi == 0)
    def _prologue():
        # Attention output projection: per-head accumulate (N = E full-width),
        # fori_loop keeps only one head's context live at a time.
        def body(h, attn):
            return attn + jnp.dot(ctx_ref[h], wo_ref[h],
                                  preferred_element_type=jnp.float32)
        attn0 = jnp.broadcast_to(bo_ref[...], x1_scr.shape).astype(jnp.float32)
        attn = lax.fori_loop(0, num_heads, body, attn0)
        x1 = x_ref[0] + attn                                   # residual 1
        x1_scr[...] = x1
        xn2_scr[...] = _layernorm(x1, g2_ref[...], s2_ref[...]).astype(jnp.bfloat16)
        h2_scr[...] = jnp.zeros_like(h2_scr)

    # Streamed FFN chunk: [tq,E] x [E,t_ff] -> GELU -> [tq,t_ff] x [t_ff,E].
    h1 = jnp.dot(xn2_scr[...], w1_ref[...],
                 preferred_element_type=jnp.float32) + b1_ref[...]
    h1 = _gelu_tanh(h1)
    h2_scr[...] += jnp.dot(h1.astype(jnp.bfloat16), w2_ref[...],
                           preferred_element_type=jnp.float32)

    @pl.when(fi == pl.num_programs(2) - 1)
    def _epilogue():
        o_ref[0] = (x1_scr[...] + h2_scr[...] + b2_ref[...]).astype(o_ref.dtype)


# ---------------------------------------------------------------------------
# Wrapper
# ---------------------------------------------------------------------------
def transformer_block(x, params, num_heads, *, q_tile=None, ff_tile=512):
    (wq, wk, wv, wo, bo, w1, b1, w2, b2, g1, s1, g2, s2) = params
    B, T, E = x.shape
    H = num_heads
    assert E % H == 0
    Dh = E // H
    H4 = w1.shape[-1]

    if q_tile is None:
        q_tile = _default_q_tile()
    tq = min(q_tile, T)
    if T % tq != 0:
        tq = T                      # TODO(synk): pad ragged sequence lengths
    n_t = T // tq

    t_ff = min(ff_tile, H4)
    if H4 % t_ff != 0:
        t_ff = H4                   # TODO(synk): ragged last FFN chunk
    n_ff = H4 // t_ff

    bf16 = jnp.bfloat16
    wq_b = wq.astype(bf16)
    wk_b = wk.astype(bf16)
    wv_b = wv.astype(bf16)
    wo_h = wo.reshape(H, Dh, E).astype(bf16)     # per-head out-proj weights
    w1_b = w1.astype(bf16)
    w2_b = w2.astype(bf16)
    scale = 1.0 / math.sqrt(Dh)

    cp2 = pltpu.CompilerParams(dimension_semantics=("parallel", "parallel"),
                               vmem_limit_bytes=_VMEM_LIMIT)
    cp3 = pltpu.CompilerParams(
        dimension_semantics=("parallel", "parallel", "arbitrary"),
        vmem_limit_bytes=_VMEM_LIMIT)
    cp4 = pltpu.CompilerParams(
        dimension_semantics=("parallel", "parallel", "parallel", "arbitrary"),
        vmem_limit_bytes=_VMEM_LIMIT)

    # --- Kernel 1: LN1 + Q/K/V projection (once per token) ------------------
    qkv_kernel = functools.partial(qkv_proj_kernel, num_heads=H, head_dim=Dh,
                                   scale=scale)
    q_hd, k_hd, v_hd = pl.pallas_call(
        qkv_kernel,
        out_shape=[jax.ShapeDtypeStruct((B, H, T, Dh), bf16)] * 3,
        grid_spec=pltpu.PrefetchScalarGridSpec(
            num_scalar_prefetch=0,
            grid=(B, n_t),
            in_specs=[
                pl.BlockSpec((1, tq, E), lambda b, t: (b, t, 0)),
                pl.BlockSpec((E, E), lambda b, t: (0, 0)),
                pl.BlockSpec((E, E), lambda b, t: (0, 0)),
                pl.BlockSpec((E, E), lambda b, t: (0, 0)),
                pl.BlockSpec((1, E), lambda b, t: (0, 0)),
                pl.BlockSpec((1, E), lambda b, t: (0, 0)),
            ],
            out_specs=[pl.BlockSpec((1, H, tq, Dh), lambda b, t: (b, 0, t, 0))] * 3,
        ),
        compiler_params=cp2,
    )(x, wq_b, wk_b, wv_b, g1, s1)

    # --- Kernel 2: causal flash attention -----------------------------------
    attn_kernel = functools.partial(flash_attn_kernel, block_q=tq, block_kv=tq)
    ctx = pl.pallas_call(
        attn_kernel,
        out_shape=jax.ShapeDtypeStruct((B, H, T, Dh), bf16),
        grid_spec=pltpu.PrefetchScalarGridSpec(
            num_scalar_prefetch=0,
            grid=(B, H, n_t, n_t),
            in_specs=[
                pl.BlockSpec((1, 1, tq, Dh),
                             lambda b, h, qi, ki: (b, h, qi, 0)),
                # clamp kv block index: above-diagonal steps issue no new DMA
                pl.BlockSpec((1, 1, tq, Dh),
                             lambda b, h, qi, ki: (b, h, jnp.minimum(ki, qi), 0)),
                pl.BlockSpec((1, 1, tq, Dh),
                             lambda b, h, qi, ki: (b, h, jnp.minimum(ki, qi), 0)),
            ],
            out_specs=pl.BlockSpec((1, 1, tq, Dh),
                                   lambda b, h, qi, ki: (b, h, qi, 0)),
            scratch_shapes=[
                pltpu.VMEM((tq, 1), jnp.float32),     # running max
                pltpu.VMEM((tq, 1), jnp.float32),     # running sum
                pltpu.VMEM((tq, Dh), jnp.float32),    # context accumulator
            ],
        ),
        compiler_params=cp4,
    )(q_hd, k_hd, v_hd)

    # --- Kernel 3: out-proj + residuals + LN2 + streamed FFN ----------------
    ffn_kernel = functools.partial(ffn_block_kernel, num_heads=H)
    out = pl.pallas_call(
        ffn_kernel,
        out_shape=jax.ShapeDtypeStruct((B, T, E), x.dtype),
        grid_spec=pltpu.PrefetchScalarGridSpec(
            num_scalar_prefetch=0,
            grid=(B, n_t, n_ff),
            in_specs=[
                pl.BlockSpec((1, tq, E), lambda b, qi, fi: (b, qi, 0)),        # x
                pl.BlockSpec((None, H, tq, Dh),
                             lambda b, qi, fi: (b, 0, qi, 0)),                 # ctx
                pl.BlockSpec((H, Dh, E), lambda b, qi, fi: (0, 0, 0)),         # Wo
                pl.BlockSpec((1, E), lambda b, qi, fi: (0, 0)),                # bo
                pl.BlockSpec((1, E), lambda b, qi, fi: (0, 0)),                # g2
                pl.BlockSpec((1, E), lambda b, qi, fi: (0, 0)),                # s2
                pl.BlockSpec((E, t_ff), lambda b, qi, fi: (0, fi)),            # W1 chunk
                pl.BlockSpec((1, t_ff), lambda b, qi, fi: (0, fi)),            # b1 chunk
                pl.BlockSpec((t_ff, E), lambda b, qi, fi: (fi, 0)),            # W2 chunk
                pl.BlockSpec((1, E), lambda b, qi, fi: (0, 0)),                # b2
            ],
            out_specs=pl.BlockSpec((1, tq, E), lambda b, qi, fi: (b, qi, 0)),
            scratch_shapes=[
                pltpu.VMEM((tq, E), jnp.float32),     # x1 (residual-1 result)
                pltpu.VMEM((tq, E), jnp.bfloat16),    # LN2(x1)
                pltpu.VMEM((tq, E), jnp.float32),     # FFN down-proj accumulator
            ],
        ),
        compiler_params=cp3,
    )(x, ctx, wo_h, bo, g2, s2, w1_b, b1, w2_b, b2)
    return out


# ---------------------------------------------------------------------------
# Pure-JAX f32 reference mirroring the PyTorch forward (eval mode)
# ---------------------------------------------------------------------------
def reference_block(x, params, num_heads):
    (wq, wk, wv, wo, bo, w1, b1, w2, b2, g1, s1, g2, s2) = params
    B, T, E = x.shape
    Dh = E // num_heads

    def ln(v, g, s):
        mu = jnp.mean(v, axis=-1, keepdims=True)
        var = jnp.mean((v - mu) ** 2, axis=-1, keepdims=True)
        return g * ((v - mu) / jnp.sqrt(var + 1e-5)) + s

    xn = ln(x, g1, s1)
    q = (xn @ wq).reshape(B, T, num_heads, Dh).transpose(0, 2, 1, 3)
    k = (xn @ wk).reshape(B, T, num_heads, Dh).transpose(0, 2, 1, 3)
    v = (xn @ wv).reshape(B, T, num_heads, Dh).transpose(0, 2, 1, 3)
    s = jnp.einsum("bhtd,bhsd->bhts", q, k)
    mask = jnp.triu(jnp.ones((T, T), bool), k=1)
    s = jnp.where(mask, -jnp.inf, s) / math.sqrt(Dh)
    p = jax.nn.softmax(s, axis=-1)
    ctx = jnp.einsum("bhts,bhsd->bhtd", p, v).transpose(0, 2, 1, 3).reshape(B, T, E)
    attn = ctx @ wo + bo
    x1 = x + attn
    xn2 = ln(x1, g2, s2)
    c = math.sqrt(2.0 / math.pi)
    h = xn2 @ w1 + b1
    h = 0.5 * h * (1.0 + jnp.tanh(c * (h + 0.044715 * h ** 3)))
    return x1 + (h @ w2 + b2)


def _make_params(key, E):
    H4 = 4 * E
    ks = jax.random.split(key, 6)
    scale = 0.05
    wq = scale * jax.random.normal(ks[0], (E, E), jnp.float32)
    wk = scale * jax.random.normal(ks[1], (E, E), jnp.float32)
    wv = scale * jax.random.normal(ks[2], (E, E), jnp.float32)
    wo = scale * jax.random.normal(ks[3], (E, E), jnp.float32)
    bo = jnp.zeros((1, E), jnp.float32)
    w1 = scale * jax.random.normal(ks[4], (E, H4), jnp.float32)
    b1 = 0.01 * jnp.ones((1, H4), jnp.float32)
    w2 = scale * jax.random.normal(ks[5], (H4, E), jnp.float32)
    b2 = 0.01 * jnp.ones((1, E), jnp.float32)
    g1 = jnp.ones((1, E), jnp.float32)
    s1 = jnp.zeros((1, E), jnp.float32)
    g2 = jnp.ones((1, E), jnp.float32)
    s2 = jnp.zeros((1, E), jnp.float32)
    return (wq, wk, wv, wo, bo, w1, b1, w2, b2, g1, s1, g2, s2)


def _run_case(key, B, T, E, H, q_tile, ff_tile):
    kx, kp = jax.random.split(key)
    x = jax.random.normal(kx, (B, T, E), jnp.float32)
    params = _make_params(kp, E)

    out = transformer_block(x, params, num_heads=H, q_tile=q_tile, ff_tile=ff_tile)
    out = jax.block_until_ready(out)
    ref = reference_block(x, params, num_heads=H)

    assert out.shape == (B, T, E)
    # bf16 MXU operands + approx reciprocal -> modest tolerance vs f32 reference
    assert jnp.allclose(out, ref, atol=3e-2, rtol=3e-2), (
        f"mismatch vs reference, max abs err {jnp.max(jnp.abs(out - ref))}")


if __name__ == "__main__":
    key = jax.random.PRNGKey(0)
    k1, k2 = jax.random.split(key)

    # Small config consistent with the module: emb_dim=32, n_heads=4, T=8, B=2.
    _run_case(k1, B=2, T=8, E=32, H=4, q_tile=128, ff_tile=512)

    # Multi-tile path: exercises q/kv tiling, causal DMA clamping, masked vs
    # unmasked kv steps, and streamed-FFN accumulation over the hidden axis.
    _run_case(k2, B=2, T=32, E=128, H=8, q_tile=8, ff_tile=128)

    print("KERNEL_OK")
</pallas_src>

<mosaic_0001>
module attributes {stable_mosaic.version = 11 : i64} {
  func.func @qkv_proj_kernel(%arg0: i32, %arg1: i32, %arg2: memref<1x8x32xf32, #tpu.memory_space<vmem>>, %arg3: memref<32x32xbf16, #tpu.memory_space<vmem>>, %arg4: memref<32x32xbf16, #tpu.memory_space<vmem>>, %arg5: memref<32x32xbf16, #tpu.memory_space<vmem>>, %arg6: memref<1x32xf32, #tpu.memory_space<vmem>>, %arg7: memref<1x32xf32, #tpu.memory_space<vmem>>, %arg8: memref<1x4x8x8xbf16, #tpu.memory_space<vmem>>, %arg9: memref<1x4x8x8xbf16, #tpu.memory_space<vmem>>, %arg10: memref<1x4x8x8xbf16, #tpu.memory_space<vmem>>) attributes {dimension_semantics = [#tpu.dimension_semantics<parallel>, #tpu.dimension_semantics<parallel>], iteration_bounds = array<i64: 2, 1>, scalar_prefetch = 0 : i64, scratch_operands = 0 : i64, tpu.core_type = #tpu.core_type<tc>, window_params = [{transform_indices = @transform_0, window_bounds = array<i64: 1, 8, 32>}, {pipeline_mode = #tpu.pipeline_mode<synchronous>, transform_indices = @transform_1, window_bounds = array<i64: 32, 32>}, {pipeline_mode = #tpu.pipeline_mode<synchronous>, transform_indices = @transform_2, window_bounds = array<i64: 32, 32>}, {pipeline_mode = #tpu.pipeline_mode<synchronous>, transform_indices = @transform_3, window_bounds = array<i64: 32, 32>}, {pipeline_mode = #tpu.pipeline_mode<synchronous>, transform_indices = @transform_4, window_bounds = array<i64: 1, 32>}, {pipeline_mode = #tpu.pipeline_mode<synchronous>, transform_indices = @transform_5, window_bounds = array<i64: 1, 32>}, {transform_indices = @transform_6, window_bounds = array<i64: 1, 4, 8, 8>}, {transform_indices = @transform_7, window_bounds = array<i64: 1, 4, 8, 8>}, {transform_indices = @transform_8, window_bounds = array<i64: 1, 4, 8, 8>}]} {
    %c0 = arith.constant 0 : index
    %c0_0 = arith.constant 0 : index
    %c0_1 = arith.constant 0 : index
    %0 = vector.load %arg2[%c0, %c0_0, %c0_1] : memref<1x8x32xf32, #tpu.memory_space<vmem>>, vector<1x8x32xf32>
    %1 = vector.shape_cast %0 : vector<1x8x32xf32> to vector<8x32xf32>
    %c0_2 = arith.constant 0 : index
    %c0_3 = arith.constant 0 : index
    %2 = vector.load %arg6[%c0_2, %c0_3] : memref<1x32xf32, #tpu.memory_space<vmem>>, vector<1x32xf32>
    %c0_4 = arith.constant 0 : index
    %c0_5 = arith.constant 0 : index
    %3 = vector.load %arg7[%c0_4, %c0_5] : memref<1x32xf32, #tpu.memory_space<vmem>>, vector<1x32xf32>
    %cst = arith.constant dense<0.000000e+00> : vector<8xf32>
    %4 = vector.multi_reduction <add>, %1, %cst [1] : vector<8x32xf32> to vector<8xf32>
    %5 = vector.shape_cast %4 : vector<8xf32> to vector<8x1xf32>
    %cst_6 = arith.constant 3.200000e+01 : f32
    %6 = vector.broadcast %cst_6 : f32 to vector<8x1xf32>
    %7 = arith.divf %5, %6 : vector<8x1xf32>
    %8 = vector.broadcast %7 : vector<8x1xf32> to vector<8x32xf32>
    %9 = arith.subf %1, %8 : vector<8x32xf32>
    %10 = arith.mulf %9, %9 : vector<8x32xf32>
    %cst_7 = arith.constant dense<0.000000e+00> : vector<8xf32>
    %11 = vector.multi_reduction <add>, %10, %cst_7 [1] : vector<8x32xf32> to vector<8xf32>
    %12 = vector.shape_cast %11 : vector<8xf32> to vector<8x1xf32>
    %cst_8 = arith.constant 3.200000e+01 : f32
    %13 = vector.broadcast %cst_8 : f32 to vector<8x1xf32>
    %14 = arith.divf %12, %13 : vector<8x1xf32>
    %cst_9 = arith.constant 9.99999974E-6 : f32
    %15 = vector.broadcast %cst_9 : f32 to vector<8x1xf32>
    %16 = arith.addf %14, %15 : vector<8x1xf32>
    %17 = math.rsqrt %16 : vector<8x1xf32>
    %18 = vector.broadcast %17 : vector<8x1xf32> to vector<8x32xf32>
    %19 = arith.mulf %9, %18 : vector<8x32xf32>
    %20 = vector.broadcast %2 : vector<1x32xf32> to vector<8x32xf32>
    %21 = arith.mulf %20, %19 : vector<8x32xf32>
    %22 = vector.broadcast %3 : vector<1x32xf32> to vector<8x32xf32>
    %23 = arith.addf %21, %22 : vector<8x32xf32>
    %24 = arith.truncf %23 : vector<8x32xf32> to vector<8x32xbf16>
    %c0_10 = arith.constant 0 : index
    %c0_11 = arith.constant 0 : index
    %25 = vector.load %arg3[%c0_10, %c0_11] : memref<32x32xbf16, #tpu.memory_space<vmem>>, vector<32x32xbf16>
    %cst_12 = arith.constant dense<0.000000e+00> : vector<8x32xf32>
    %26 = tpu.matmul %24, %25, %cst_12 {dimension_numbers = #tpu.dot_dimension_numbers<[1], [0], [0], [1], [0, 0, 1, 1], [], []>} : vector<8x32xbf16>, vector<32x32xbf16>, vector<8x32xf32> -> vector<8x32xf32>
    %cst_13 = arith.constant 0.353553385 : f32
    %27 = vector.broadcast %cst_13 : f32 to vector<8x32xf32>
    %28 = arith.mulf %26, %27 : vector<8x32xf32>
    %c0_14 = arith.constant 0 : index
    %c0_15 = arith.constant 0 : index
    %29 = vector.load %arg4[%c0_14, %c0_15] : memref<32x32xbf16, #tpu.memory_space<vmem>>, vector<32x32xbf16>
    %cst_16 = arith.constant dense<0.000000e+00> : vector<8x32xf32>
    %30 = tpu.matmul %24, %29, %cst_16 {dimension_numbers = #tpu.dot_dimension_numbers<[1], [0], [0], [1], [0, 0, 1, 1], [], []>} : vector<8x32xbf16>, vector<32x32xbf16>, vector<8x32xf32> -> vector<8x32xf32>
    %c0_17 = arith.constant 0 : index
    %c0_18 = arith.constant 0 : index
    %31 = vector.load %arg5[%c0_17, %c0_18] : memref<32x32xbf16, #tpu.memory_space<vmem>>, vector<32x32xbf16>
    %cst_19 = arith.constant dense<0.000000e+00> : vector<8x32xf32>
    %32 = tpu.matmul %24, %31, %cst_19 {dimension_numbers = #tpu.dot_dimension_numbers<[1], [0], [0], [1], [0, 0, 1, 1], [], []>} : vector<8x32xbf16>, vector<32x32xbf16>, vector<8x32xf32> -> vector<8x32xf32>
    %33 = arith.truncf %28 : vector<8x32xf32> to vector<8x32xbf16>
    %34 = arith.truncf %30 : vector<8x32xf32> to vector<8x32xbf16>
    %35 = arith.truncf %32 : vector<8x32xf32> to vector<8x32xbf16>
    %36 = vector.extract_strided_slice %33 {offsets = [0, 0], sizes = [8, 8], strides = [1, 1]} : vector<8x32xbf16> to vector<8x8xbf16>
    %c0_20 = arith.constant 0 : index
    %c0_21 = arith.constant 0 : index
    %c0_22 = arith.constant 0 : index
    %c0_23 = arith.constant 0 : index
    %37 = vector.load %arg8[%c0_20, %c0_21, %c0_22, %c0_23] : memref<1x4x8x8xbf16, #tpu.memory_space<vmem>>, vector<1x1x8x8xbf16>
    %38 = vector.shape_cast %37 : vector<1x1x8x8xbf16> to vector<8x8xbf16>
    %39 = vector.shape_cast %36 : vector<8x8xbf16> to vector<1x1x8x8xbf16>
    tpu.vector_store %arg8[%c0_20, %c0_21, %c0_22, %c0_23], %39 {strides = array<i32>} : memref<1x4x8x8xbf16, #tpu.memory_space<vmem>>, vector<1x1x8x8xbf16>,
    %40 = vector.extract_strided_slice %34 {offsets = [0, 0], sizes = [8, 8], strides = [1, 1]} : vector<8x32xbf16> to vector<8x8xbf16>
    %c0_24 = arith.constant 0 : index
    %c0_25 = arith.constant 0 : index
    %c0_26 = arith.constant 0 : index
    %c0_27 = arith.constant 0 : index
    %41 = vector.load %arg9[%c0_24, %c0_25, %c0_26, %c0_27] : memref<1x4x8x8xbf16, #tpu.memory_space<vmem>>, vector<1x1x8x8xbf16>
    %42 = vector.shape_cast %41 : vector<1x1x8x8xbf16> to vector<8x8xbf16>
    %43 = vector.shape_cast %40 : vector<8x8xbf16> to vector<1x1x8x8xbf16>
    tpu.vector_store %arg9[%c0_24, %c0_25, %c0_26, %c0_27], %43 {strides = array<i32>} : memref<1x4x8x8xbf16, #tpu.memory_space<vmem>>, vector<1x1x8x8xbf16>,
    %44 = vector.extract_strided_slice %35 {offsets = [0, 0], sizes = [8, 8], strides = [1, 1]} : vector<8x32xbf16> to vector<8x8xbf16>
    %c0_28 = arith.constant 0 : index
    %c0_29 = arith.constant 0 : index
    %c0_30 = arith.constant 0 : index
    %c0_31 = arith.constant 0 : index
    %45 = vector.load %arg10[%c0_28, %c0_29, %c0_30, %c0_31] : memref<1x4x8x8xbf16, #tpu.memory_space<vmem>>, vector<1x1x8x8xbf16>
    %46 = vector.shape_cast %45 : vector<1x1x8x8xbf16> to vector<8x8xbf16>
    %47 = vector.shape_cast %44 : vector<8x8xbf16> to vector<1x1x8x8xbf16>
    tpu.vector_store %arg10[%c0_28, %c0_29, %c0_30, %c0_31], %47 {strides = array<i32>} : memref<1x4x8x8xbf16, #tpu.memory_space<vmem>>, vector<1x1x8x8xbf16>,
    %48 = vector.extract_strided_slice %33 {offsets = [0, 8], sizes = [8, 8], strides = [1, 1]} : vector<8x32xbf16> to vector<8x8xbf16>
    %c0_32 = arith.constant 0 : index
    %c1 = arith.constant 1 : index
    %c0_33 = arith.constant 0 : index
    %c0_34 = arith.constant 0 : index
    %49 = vector.load %arg8[%c0_32, %c1, %c0_33, %c0_34] : memref<1x4x8x8xbf16, #tpu.memory_space<vmem>>, vector<1x1x8x8xbf16>
    %50 = vector.shape_cast %49 : vector<1x1x8x8xbf16> to vector<8x8xbf16>
    %51 = vector.shape_cast %48 : vector<8x8xbf16> to vector<1x1x8x8xbf16>
    tpu.vector_store %arg8[%c0_32, %c1, %c0_33, %c0_34], %51 {strides = array<i32>} : memref<1x4x8x8xbf16, #tpu.memory_space<vmem>>, vector<1x1x8x8xbf16>,
    %52 = vector.extract_strided_slice %34 {offsets = [0, 8], sizes = [8, 8], strides = [1, 1]} : vector<8x32xbf16> to vector<8x8xbf16>
    %c0_35 = arith.constant 0 : index
    %c1_36 = arith.constant 1 : index
    %c0_37 = arith.constant 0 : index
    %c0_38 = arith.constant 0 : index
    %53 = vector.load %arg9[%c0_35, %c1_36, %c0_37, %c0_38] : memref<1x4x8x8xbf16, #tpu.memory_space<vmem>>, vector<1x1x8x8xbf16>
    %54 = vector.shape_cast %53 : vector<1x1x8x8xbf16> to vector<8x8xbf16>
    %55 = vector.shape_cast %52 : vector<8x8xbf16> to vector<1x1x8x8xbf16>
    tpu.vector_store %arg9[%c0_35, %c1_36, %c0_37, %c0_38], %55 {strides = array<i32>} : memref<1x4x8x8xbf16, #tpu.memory_space<vmem>>, vector<1x1x8x8xbf16>,
    %56 = vector.extract_strided_slice %35 {offsets = [0, 8], sizes = [8, 8], strides = [1, 1]} : vector<8x32xbf16> to vector<8x8xbf16>
    %c0_39 = arith.constant 0 : index
    %c1_40 = arith.constant 1 : index
    %c0_41 = arith.constant 0 : index
    %c0_42 = arith.constant 0 : index
    %57 = vector.load %arg10[%c0_39, %c1_40, %c0_41, %c0_42] : memref<1x4x8x8xbf16, #tpu.memory_space<vmem>>, vector<1x1x8x8xbf16>
    %58 = vector.shape_cast %57 : vector<1x1x8x8xbf16> to vector<8x8xbf16>
    %59 = vector.shape_cast %56 : vector<8x8xbf16> to vector<1x1x8x8xbf16>
    tpu.vector_store %arg10[%c0_39, %c1_40, %c0_41, %c0_42], %59 {strides = array<i32>} : memref<1x4x8x8xbf16, #tpu.memory_space<vmem>>, vector<1x1x8x8xbf16>,
    %60 = vector.extract_strided_slice %33 {offsets = [0, 16], sizes = [8, 8], strides = [1, 1]} : vector<8x32xbf16> to vector<8x8xbf16>
    %c0_43 = arith.constant 0 : index
    %c2 = arith.constant 2 : index
    %c0_44 = arith.constant 0 : index
    %c0_45 = arith.constant 0 : index
    %61 = vector.load %arg8[%c0_43, %c2, %c0_44, %c0_45] : memref<1x4x8x8xbf16, #tpu.memory_space<vmem>>, vector<1x1x8x8xbf16>
    %62 = vector.shape_cast %61 : vector<1x1x8x8xbf16> to vector<8x8xbf16>
    %63 = vector.shape_cast %60 : vector<8x8xbf16> to vector<1x1x8x8xbf16>
    tpu.vector_store %arg8[%c0_43, %c2, %c0_44, %c0_45], %63 {strides = array<i32>} : memref<1x4x8x8xbf16, #tpu.memory_space<vmem>>, vector<1x1x8x8xbf16>,
    %64 = vector.extract_strided_slice %34 {offsets = [0, 16], sizes = [8, 8], strides = [1, 1]} : vector<8x32xbf16> to vector<8x8xbf16>
    %c0_46 = arith.constant 0 : index
    %c2_47 = arith.constant 2 : index
    %c0_48 = arith.constant 0 : index
    %c0_49 = arith.constant 0 : index
    %65 = vector.load %arg9[%c0_46, %c2_47, %c0_48, %c0_49] : memref<1x4x8x8xbf16, #tpu.memory_space<vmem>>, vector<1x1x8x8xbf16>
    %66 = vector.shape_cast %65 : vector<1x1x8x8xbf16> to vector<8x8xbf16>
    %67 = vector.shape_cast %64 : vector<8x8xbf16> to vector<1x1x8x8xbf16>
    tpu.vector_store %arg9[%c0_46, %c2_47, %c0_48, %c0_49], %67 {strides = array<i32>} : memref<1x4x8x8xbf16, #tpu.memory_space<vmem>>, vector<1x1x8x8xbf16>,
    %68 = vector.extract_strided_slice %35 {offsets = [0, 16], sizes = [8, 8], strides = [1, 1]} : vector<8x32xbf16> to vector<8x8xbf16>
    %c0_50 = arith.constant 0 : index
    %c2_51 = arith.constant 2 : index
    %c0_52 = arith.constant 0 : index
    %c0_53 = arith.constant 0 : index
    %69 = vector.load %arg10[%c0_50, %c2_51, %c0_52, %c0_53] : memref<1x4x8x8xbf16, #tpu.memory_space<vmem>>, vector<1x1x8x8xbf16>
    %70 = vector.shape_cast %69 : vector<1x1x8x8xbf16> to vector<8x8xbf16>
    %71 = vector.shape_cast %68 : vector<8x8xbf16> to vector<1x1x8x8xbf16>
    tpu.vector_store %arg10[%c0_50, %c2_51, %c0_52, %c0_53], %71 {strides = array<i32>} : memref<1x4x8x8xbf16, #tpu.memory_space<vmem>>, vector<1x1x8x8xbf16>,
    %72 = vector.extract_strided_slice %33 {offsets = [0, 24], sizes = [8, 8], strides = [1, 1]} : vector<8x32xbf16> to vector<8x8xbf16>
    %c0_54 = arith.constant 0 : index
    %c3 = arith.constant 3 : index
    %c0_55 = arith.constant 0 : index
    %c0_56 = arith.constant 0 : index
    %73 = vector.load %arg8[%c0_54, %c3, %c0_55, %c0_56] : memref<1x4x8x8xbf16, #tpu.memory_space<vmem>>, vector<1x1x8x8xbf16>
    %74 = vector.shape_cast %73 : vector<1x1x8x8xbf16> to vector<8x8xbf16>
    %75 = vector.shape_cast %72 : vector<8x8xbf16> to vector<1x1x8x8xbf16>
    tpu.vector_store %arg8[%c0_54, %c3, %c0_55, %c0_56], %75 {strides = array<i32>} : memref<1x4x8x8xbf16, #tpu.memory_space<vmem>>, vector<1x1x8x8xbf16>,
    %76 = vector.extract_strided_slice %34 {offsets = [0, 24], sizes = [8, 8], strides = [1, 1]} : vector<8x32xbf16> to vector<8x8xbf16>
    %c0_57 = arith.constant 0 : index
    %c3_58 = arith.constant 3 : index
    %c0_59 = arith.constant 0 : index
    %c0_60 = arith.constant 0 : index
    %77 = vector.load %arg9[%c0_57, %c3_58, %c0_59, %c0_60] : memref<1x4x8x8xbf16, #tpu.memory_space<vmem>>, vector<1x1x8x8xbf16>
    %78 = vector.shape_cast %77 : vector<1x1x8x8xbf16> to vector<8x8xbf16>
    %79 = vector.shape_cast %76 : vector<8x8xbf16> to vector<1x1x8x8xbf16>
    tpu.vector_store %arg9[%c0_57, %c3_58, %c0_59, %c0_60], %79 {strides = array<i32>} : memref<1x4x8x8xbf16, #tpu.memory_space<vmem>>, vector<1x1x8x8xbf16>,
    %80 = vector.extract_strided_slice %35 {offsets = [0, 24], sizes = [8, 8], strides = [1, 1]} : vector<8x32xbf16> to vector<8x8xbf16>
    %c0_61 = arith.constant 0 : index
    %c3_62 = arith.constant 3 : index
    %c0_63 = arith.constant 0 : index
    %c0_64 = arith.constant 0 : index
    %81 = vector.load %arg10[%c0_61, %c3_62, %c0_63, %c0_64] : memref<1x4x8x8xbf16, #tpu.memory_space<vmem>>, vector<1x1x8x8xbf16>
    %82 = vector.shape_cast %81 : vector<1x1x8x8xbf16> to vector<8x8xbf16>
    %83 = vector.shape_cast %80 : vector<8x8xbf16> to vector<1x1x8x8xbf16>
    tpu.vector_store %arg10[%c0_61, %c3_62, %c0_63, %c0_64], %83 {strides = array<i32>} : memref<1x4x8x8xbf16, #tpu.memory_space<vmem>>, vector<1x1x8x8xbf16>,
    return
  }
  func.func @transform_0(%arg0: i32, %arg1: i32) -> (i32, i32, i32) {
    %c0_i32 = arith.constant 0 : i32
    %c0_i32_0 = arith.constant 0 : i32
    return %arg0, %arg1, %c0_i32 : i32, i32, i32
  }
  func.func @transform_1(%arg0: i32, %arg1: i32) -> (i32, i32) {
    %c0_i32 = arith.constant 0 : i32
    %c0_i32_0 = arith.constant 0 : i32
    %c0_i32_1 = arith.constant 0 : i32
    return %c0_i32, %c0_i32_0 : i32, i32
  }
  func.func @transform_2(%arg0: i32, %arg1: i32) -> (i32, i32) {
    %c0_i32 = arith.constant 0 : i32
    %c0_i32_0 = arith.constant 0 : i32
    %c0_i32_1 = arith.constant 0 : i32
    return %c0_i32, %c0_i32_0 : i32, i32
  }
  func.func @transform_3(%arg0: i32, %arg1: i32) -> (i32, i32) {
    %c0_i32 = arith.constant 0 : i32
    %c0_i32_0 = arith.constant 0 : i32
    %c0_i32_1 = arith.constant 0 : i32
    return %c0_i32, %c0_i32_0 : i32, i32
  }
  func.func @transform_4(%arg0: i32, %arg1: i32) -> (i32, i32) {
    %c0_i32 = arith.constant 0 : i32
    %c0_i32_0 = arith.constant 0 : i32
    %c0_i32_1 = arith.constant 0 : i32
    return %c0_i32, %c0_i32_0 : i32, i32
  }
  func.func @transform_5(%arg0: i32, %arg1: i32) -> (i32, i32) {
    %c0_i32 = arith.constant 0 : i32
    %c0_i32_0 = arith.constant 0 : i32
    %c0_i32_1 = arith.constant 0 : i32
    return %c0_i32, %c0_i32_0 : i32, i32
  }
  func.func @transform_6(%arg0: i32, %arg1: i32) -> (i32, i32, i32, i32) {
    %c0_i32 = arith.constant 0 : i32
    %c0_i32_0 = arith.constant 0 : i32
    %c0_i32_1 = arith.constant 0 : i32
    return %arg0, %c0_i32, %arg1, %c0_i32_0 : i32, i32, i32, i32
  }
  func.func @transform_7(%arg0: i32, %arg1: i32) -> (i32, i32, i32, i32) {
    %c0_i32 = arith.constant 0 : i32
    %c0_i32_0 = arith.constant 0 : i32
    %c0_i32_1 = arith.constant 0 : i32
    return %arg0, %c0_i32, %arg1, %c0_i32_0 : i32, i32, i32, i32
  }
  func.func @transform_8(%arg0: i32, %arg1: i32) -> (i32, i32, i32, i32) {
    %c0_i32 = arith.constant 0 : i32
    %c0_i32_0 = arith.constant 0 : i32
    %c0_i32_1 = arith.constant 0 : i32
    return %arg0, %c0_i32, %arg1, %c0_i32_0 : i32, i32, i32, i32
  }
}

</mosaic_0001>

<bundles_post_ra>
// kernel: tpu_custom_call.1
= control target key start
LH: loop header
LB: loop body
LE: loop exit
PB: predicated region body
PF: predicated region fallthrough
CT: control target
= control target key end

     0   :  { %s1854_s0 = inlined_call_operand.hbm [shape: f32[2,8,32], index: 0, kind: input, shape index: {}]   ;;  %s1855_s1 = inlined_call_operand.hbm [shape: bf16[32,32], index: 1, kind: input, shape index: {}]   ;;  %s1856_s2 = inlined_call_operand.hbm [shape: bf16[32,32], index: 2, kind: input, shape index: {}]   ;;  %s1857_s3 = inlined_call_operand.hbm [shape: bf16[32,32], index: 3, kind: input, shape index: {}]   ;;  %s1858_s4 = inlined_call_operand.vmem [shape: f32[1,32], index: 4, kind: input, shape index: {}]   ;;  %s1859_s5 = inlined_call_operand.vmem [shape: f32[1,32], index: 5, kind: input, shape index: {}]   ;;  %s1860_s6 = inlined_call_operand.hbm [shape: bf16[2,4,8,8], index: 6, kind: output, shape index: {0}]   ;;  %s1861_s7 = inlined_call_operand.hbm [shape: bf16[2,4,8,8], index: 7, kind: output, shape index: {1}]   ;;  %s1862_s8 = inlined_call_operand.hbm [shape: bf16[2,4,8,8], index: 8, kind: output, shape index: {2}]  }
   0x1   :  { %1873 = sst [smem:[#allocation21_spill]] %s1860_s6 }
   0x2   :  { %1874 = sst [smem:[#allocation22_spill]] %s1862_s8 }
   0x3   :  { %14 = vsyncpa [#allocation3], 0 }
   0x4   :  { %16 = vsyncpa [#allocation3 + $0x1], 0 }
   0x5   :  { %17 = vsyncpa [#allocation6], 0 }
   0x6   :  { %18 = vsyncpa [#allocation9], 0 }
   0x7   :  { %19 = vsyncpa [#allocation4], 0 }
   0x8   :  { %21 = vsyncpa [#allocation4 + $0x1], 0 }
   0x9   :  { %22 = vsyncpa [#allocation12], 0 }
   0xa   :  { %24 = vsyncpa [#allocation12 + $0x1], 0  ;;  %s1445_s27 = smov 0   ;;  %s1447_s28 = smov 0  }
   0xb   :  { %s1449_s29 = smov 0   ;;  %s1451_s30 = smov 0  }
   0xc   :  { %s1453_s9 = smov 0   ;;  %s1455_s10 = smov 0  }
   0xd LB: > { %1875 = sst [smem:[#allocation19_spill]] %s1362_s27  ;;  %s1476_s11 = sadd.s32 4294967295, %s1382_s10   ;;  %s1382_s10 = sphi %s1455_s10, %s30_s10   ;;  %s1378_s9 = sphi %s1453_s9, %s1904_s9   ;;  %s1374_s30 = sphi %s1451_s30, %s1903_s30   ;;  %s1370_s29 = sphi %s1449_s29, %s1902_s29   ;;  %s1366_s28 = sphi %s1447_s28, %s1901_s28   ;;  %s1362_s27 = sphi %s1445_s27, %s1900_s27  }
   0xe   : > { %s1863_s12 = sadd.s32 4294967294, %s1382_s10   ;;  %p64_p0 = scmp.ne.s32.totalorder %s1366_s28, %s1362_s27 }
   0xf   : > { %p1864_p1 = scmp.eq.s32.totalorder %s1476_s11, 0  ;;  %p201_p3 = scmp.eq.s32.totalorder %s1863_s12, 1 }
  0x10   : > { %p910_p5 = scmp.ge.s32.totalorder %s1382_s10, 1  ;;  %p264_p7 = scmp.lt.s32.totalorder %s1382_s10, 3 }
  0x11   : > { %p1487_p4 = por %p1864_p1, %p64_p0  ;;  %p1492_p6 = por %p201_p3, %p64_p0 }
  0x12   : > { %p1497_p8 = pnand %p910_p5, %p264_p7  ;;  %s1384_s16 = smov [#allocation5]  }
  0x13   : > { %s1876_s13 = scalar_select %p1487_p4, 1, 0 }
  0x14   : > { %s1877_s14 = scalar_select %p1492_p6, 1, 0 }
  0x15   : > { %s1879_s15 = scalar_select %p1497_p8, 1, 0 }
  0x16   : > { %1878 = sst [smem:[#allocation20_spill]] %s1877_s14  ;;  %s276_s17 = sshll.u32 %s1384_s16, 4  ;;  %s1501_s17 = int_to_ptr.vmem [resolvable:$true] %s276_s17 }
  0x17   : > { %p1018_p9 = pneg %p1497_p8  ;;  %s1385_s19 = smov [#allocation7]  }
  0x18   : > { %s289_s20 = sshll.u32 %s1385_s19, 4  ;;  %s1386_s21 = smov [#allocation8]   ;;  %s1512_s20 = int_to_ptr.vmem [resolvable:$true] %s289_s20 }
  0x19   : > { %p1508_p11 = pnand %p1018_p9, %p1864_p1  ;;  %s1514_s22 = sshll.u32 %s1386_s21, 4  ;;  %s303_s22 = int_to_ptr.vmem [resolvable:$true] %s1514_s22 }
  0x1a   : > { %s1118_s25 = scalar_lea.hbm %s1855_s1, 256 }
  0x1b   : > { %p1119_p12 = scmp.ne.s32.totalorder %s1855_s1, %s1118_s25  ;;  %p1524_p13 = pneg %p1508_p11 }
  0x1c   : > { %p1125_p5 = scmp.lt.u32.totalorder %s1118_s25, %s1855_s1 }
  0x1d   : > { %p1121_p0 = pnand %p1524_p13, %p1119_p12 }
  0x1f   : > { %p1122_p3 = pneg %p1121_p0 }
  0x21   : > { %p1127_p7 = pnand %p1125_p5, %p1122_p3 }
  0x23   : > { %1130 = shalt.err (!%p1127_p7)
}
  0x24   : > { %s1131_s23 = scalar_lea.vmem %s1501_s17, 256  ;;  %p1139_p2 = scmp.lt.s32.totalorder %s1501_s17, %s1501_s17 }
  0x25   : > { %p1132_p9 = scmp.ne.s32.totalorder %s1501_s17, %s1131_s23  ;;  %p1140_p6 = scmp.lt.s32.totalorder %s1131_s23, %s1131_s23 }
  0x27   : > { %p1134_p10 = pnand %p1132_p9, %p1524_p13  ;;  %p1141_p12 = por %p1140_p6, %p1139_p2 }
  0x29   : > { %p1135_p1 = pneg %p1134_p10 }
  0x2b   : > { %p1142_p0 = pnand %p1141_p12, %p1135_p1 }
  0x2d   : > { %1145 = shalt.err (!%p1142_p0)
}
  0x2e   : > { %s1387_s24 = smov 64   ;;  %s1388_s25 = smov 4  }
  0x2f   : > { %1021 = dma.hbm_to_vmem [thread:$0]  (!%p1508_p11), %s1855_s1, 256, %s1501_s17, [#allocation6], %s1387_s24, %s1387_s24, %s1388_s25  }
  0x30   : > { %s1146_s23 = scalar_lea.hbm %s1856_s2, 256 }
  0x31   : > { %p1147_p1 = scmp.ne.s32.totalorder %s1856_s2, %s1146_s23  ;;  %p1153_p10 = scmp.lt.u32.totalorder %s1146_s23, %s1856_s2 }
  0x33   : > { %p1149_p2 = pnand %p1147_p1, %p1524_p13 }
  0x35   : > { %p1150_p6 = pneg %p1149_p2 }
  0x37   : > { %p1155_p3 = pnand %p1153_p10, %p1150_p6 }
  0x39   : > { %1158 = shalt.err (!%p1155_p3)
}
  0x3a   : > { %s1159_s17 = scalar_lea.vmem %s1512_s20, 256  ;;  %p1167_p12 = scmp.lt.s32.totalorder %s1512_s20, %s1512_s20 }
  0x3b   : > { %p1160_p5 = scmp.ne.s32.totalorder %s1512_s20, %s1159_s17  ;;  %p1168_p0 = scmp.lt.s32.totalorder %s1159_s17, %s1159_s17 }
  0x3d   : > { %p1162_p7 = pnand %p1160_p5, %p1524_p13  ;;  %p1169_p1 = por %p1168_p0, %p1167_p12 }
  0x3f   : > { %p1163_p9 = pneg %p1162_p7 }
  0x41   : > { %p1170_p2 = pnand %p1169_p1, %p1163_p9 }
  0x43   : > { %1173 = shalt.err (!%p1170_p2)
}
  0x44   : > { %1024 = dma.hbm_to_vmem [thread:$0]  (!%p1508_p11), %s1856_s2, 256, %s1512_s20, [#allocation6], %s1387_s24, %s1387_s24, %s1388_s25  }
  0x45   : > { %s1174_s26 = scalar_lea.hbm %s1857_s3, 256 }
  0x46   : > { %p1175_p6 = scmp.ne.s32.totalorder %s1857_s3, %s1174_s26  ;;  %p1181_p5 = scmp.lt.u32.totalorder %s1174_s26, %s1857_s3 }
  0x48   : > { %p1177_p10 = pnand %p1175_p6, %p1524_p13 }
  0x4a   : > { %p1178_p3 = pneg %p1177_p10 }
  0x4c   : > { %p1183_p7 = pnand %p1181_p5, %p1178_p3 }
  0x4e   : > { %1186 = shalt.err (!%p1183_p7)
}
  0x4f   : > { %s1187_s17 = scalar_lea.vmem %s303_s22, 256  ;;  %p1195_p1 = scmp.lt.s32.totalorder %s303_s22, %s303_s22 }
  0x50   : > { %p1188_p9 = scmp.ne.s32.totalorder %s303_s22, %s1187_s17  ;;  %p1196_p2 = scmp.lt.s32.totalorder %s1187_s17, %s1187_s17 }
  0x52   : > { %p1190_p12 = pnand %p1188_p9, %p1524_p13  ;;  %p1197_p4 = por %p1196_p2, %p1195_p1 }
  0x54   : > { %p1191_p0 = pneg %p1190_p12 }
  0x56   : > { %p1198_p8 = pnand %p1197_p4, %p1191_p0 }
  0x58   : > { %1201 = shalt.err (!%p1198_p8)
}
  0x59   : > { %1027 = dma.hbm_to_vmem [thread:$0]  (!%p1508_p11), %s1857_s3, 256, %s303_s22, [#allocation9], %s1387_s24, %s1387_s24, %s1388_s25  }
  0x5a   : > { %s51_s12 = sadd.s32 1, %s1370_s29  ;;  %s42_s18 = sadd.s32 1, %s1378_s9 }
  0x5b   : > { %p58_p4 = scmp.ne.s32.totalorder %s1370_s29, %s1366_s28  ;;  %p44_p8 = scmp.ge.s32.totalorder %s42_s18, 2 }
  0x5c   : > { %p59_p13 = scmp.eq.s32.totalorder %s1382_s10, 0  ;;  %p1882_p6 = scmp.eq.s32.totalorder %s1476_s11, 1 }
  0x5d   : > { %p1045_p3 = scmp.lt.s32.totalorder %s1382_s10, 2  ;;  %s1906_s18 = smov (%p44_p8, %s42_s18), 0 }
  0x5e   : > { %p1603_p10 = por %p1882_p6, %p58_p4  ;;  %p60_p5 = por %p59_p13, %p58_p4 }
  0x5f   : > { %s322_s27 = sand.u32 1, %s1370_s29   ;;  %s46_s14 = ssub.s32 %s1378_s9, %s1906_s18 }
  0x60   : > { %p49_p7 = scmp.eq.s32.totalorder %s46_s14, 0  ;;  %s915_s22 = sshll.u32 %s322_s27, 3 }
  0x61   : > { %s916_s24 = sshll.u32 %s1378_s9, 7  ;;  %s326_s21 = scalar_lea.vmem [#allocation2], %s915_s22 }
  0x62   : > { %s1615_s25 = scalar_select %p49_p7, %s1370_s29, %s51_s12  }
  0x63   : > { %s1620_s19 = scalar_lea.hbm %s1854_s0, %s916_s24  ;;  %s334_s23 = sshll.u32 %s326_s21, 4  ;;  %s1622_s23 = int_to_ptr.vmem [resolvable:$true] %s334_s23 }
  0x64   : > { %p1626_p11 = pnand %p1045_p3, %p60_p5  ;;  %s323_s20 = scalar_lea.sflag [#allocation3], %s322_s27 }
  0x65   : > { %s1202_s6 = scalar_lea.hbm %s1620_s19, 128  ;;  %s1207_s22 = scalar_lea.hbm %s1854_s0, 256 }
  0x66   : > { %p1203_p9 = scmp.ne.s32.totalorder %s1620_s19, %s1202_s6  ;;  %p1204_p12 = pneg %p1626_p11 }
  0x67   : > { %p1208_p2 = scmp.lt.u32.totalorder %s1620_s19, %s1854_s0  ;;  %p1209_p4 = scmp.lt.u32.totalorder %s1207_s22, %s1202_s6 }
  0x68   : > { %p1205_p0 = pnand %p1204_p12, %p1203_p9  ;;  %p1211_p13 = scmp.lt.u32.totalorder %s1202_s6, %s1620_s19 }
  0x69   : > { %p1210_p8 = por %p1209_p4, %p1208_p2 }
  0x6a   : > { %p1206_p1 = pneg %p1205_p0 }
  0x6b   : > { %p1212_p6 = por %p1211_p13, %p1210_p8 }
  0x6d   : > { %p1213_p3 = pnand %p1212_p6, %p1206_p1 }
  0x6f   : > { %1216 = shalt.err (!%p1213_p3)
}
  0x70   : > { %s1217_s27 = scalar_lea.vmem %s1622_s23, 128  ;;  %s1389_s16 = smov [#allocation2]  }
  0x71   : > { %p1218_p5 = scmp.ne.s32.totalorder %s1622_s23, %s1217_s27  ;;  %s1222_s21 = sshll.u32 %s1389_s16, 4  ;;  %s1223_s21 = int_to_ptr.vmem [resolvable:$false] %s1222_s21 }
  0x72   : > { %s1224_s12 = scalar_lea.vmem %s1223_s21, 256  ;;  %p1225_p0 = scmp.lt.s32.totalorder %s1622_s23, %s1223_s21 }
  0x73   : > { %p1220_p7 = pnand %p1218_p5, %p1204_p12  ;;  %p1226_p2 = scmp.lt.s32.totalorder %s1224_s12, %s1217_s27 }
  0x75   : > { %p1221_p9 = pneg %p1220_p7  ;;  %p1227_p4 = por %p1226_p2, %p1225_p0 }
  0x77   : > { %p1228_p8 = pnand %p1227_p4, %p1221_p9 }
  0x79   : > { %1231 = shalt.err (!%p1228_p8)
}
  0x7a   : > { %1031 = dma.hbm_to_vmem [thread:$0]  (!%p1626_p11), %s1620_s19, 128, %s1622_s23, %s323_s20  }
  0x7b   : > { %p1885_p1 = scmp.ne.s32.totalorder %s1879_s15, 0 }
  0x7c   : > { %s1658_s6 = sand.u32 (!%p1885_p1), 1, %s1366_s28   ;;  %p1886_p12 = scmp.ne.s32.totalorder (!%p1885_p1), %s1876_s13, 0 }
  0x7d   : > { %343 = sbr.rel (%p1885_p1) target bundleno = 852 (0x354), region = 44  ;;  %s918_s14 = sshll.u32 (!%p1885_p1), %s1658_s6, 3 }
  0x7e   : > { %s346_s22 = scalar_lea.sflag (!%p1885_p1), [#allocation3], %s1658_s6  ;;  %s349_s24 = scalar_lea.vmem (!%p1885_p1), [#allocation2], %s918_s14 }
  0x84   : > { %1341 = dma.done.wait (%p1886_p12), %s346_s22, 128  }
  0x85   : > { %1343 = vsyncadd (%p1886_p12), %s346_s22, 4294967168  ;;  %p1887_p13 = scmp.eq.s32.totalorder %s1476_s11, 0 }
  0x87   : > { %1345 = dma.done.wait (%p1887_p13), [#allocation6], 512   ;;  %p1888_p11 = pmov %p1887_p13 }
  0x89   : > { %1347 = vsyncadd (%p1888_p11), [#allocation6], 4294966784  ;;  %p1889_p6 = pmov %p1888_p11 }
  0x8b   : > { %1349 = dma.done.wait (%p1889_p6), [#allocation9], 256   ;;  %p1890_p3 = pmov %p1889_p6 }
  0x8c   : > { %vm408_vm0 = vcmask 261120   ;;  %v405_v0 = vld [vmem:[%s349_s24] sm:$0xff]  ;;  %v1110_v7 = vld [vmem:[#allocation5] sm:$0xff]   ;;  %v1390_v9 = vmov 0.0   ;;  %v1112_v10 = vld [vmem:[#allocation5 + $0x8] sm:$0xff]   ;;  %vm1391_vm1 = vmmov 0  }
  0x8d   : > { %1351 = vsyncadd (%p1890_p3), [#allocation9], 4294967040  ;;  %v409_v1 = vsel %vm408_vm0, %v405_v0, 0.0  ;;  %v1111_v8 = vld [vmem:[#allocation7] sm:$0xff]   ;;  %974 = vmatprep.subr.bf16.mxu0 %v1390_v9  ;;  %982 = vmatprep.subr.bf16.mxu1 %v1390_v9  ;;  %v1113_v11 = vld [vmem:[#allocation7 + $0x8] sm:$0xff]   ;;  %s922_s17 = sshll.u32 %s1658_s6, 4 }
  0x8e   : > { %410 = vadd.xlane.f32.xlu0 %v409_v1  ;;  %975 = vmatpush3.bf16.msra.mxu0 %v1110_v7  ;;  %v925_v16 = vld [vmem:[%s1858_s4] ss:$0 sm:$0xff]  ;;  %v1114_v21 = vld [vmem:[#allocation8] sm:$0xff]   ;;  %v1115_v23 = vld [vmem:[#allocation8 + $0x8] sm:$0xff]   ;;  %vm613_vm2 = vcmask 60416   ;;  %s1689_s20 = scalar_lea.vmem [#allocation11], %s922_s17 }
  0x8f   : > { %983 = vmatpush3.bf16.msra.mxu1 %v1111_v8  ;;  %976 = vmatprep.subr.bf16.mxu0 %v1390_v9  ;;  %v926_v18 = vld [vmem:[%s1859_s5] ss:$0 sm:$0xff]  ;;  %s1392_s26 = smov 104   ;;  %s1393_s27 = smov 120  }
  0x90   : > { %984 = vmatprep.subr.bf16.mxu1 %v1390_v9  ;;  %978 = vmatprep.mubr.msk.bf16.mxu0 %vm1391_vm1, %v1390_v9  ;;  %s1693_s16 = scalar_lea.vmem [#allocation10], %s922_s17  ;;  %s1394_s21 = smov 112  }
  0x91   : > { %986 = vmatprep.mubr.msk.bf16.mxu1 %vm1391_vm1, %v1390_v9  ;;  %s1697_s12 = scalar_lea.vmem [#allocation13], %s922_s17  ;;  %s713_s14 = sshll.u32 %s1689_s20, 4  ;;  %s1706_s14 = int_to_ptr.vmem [resolvable:$true] %s713_s14 }
  0x92   : > { %977 = vmatpush3.bf16.msra.mxu0 %v1112_v10  ;;  %s676_s22 = sand.u32 1, %s1476_s11   ;;  %s1704_s24 = sshll.u32 %s1374_s30, 8 }
  0x93   : > { %985 = vmatpush3.bf16.msra.mxu1 %v1113_v11  ;;  %990 = vmatprep.subr.bf16.mxu0 %v1390_v9  ;;  %s1716_s19 = scalar_lea.hbm %s1861_s7, %s1704_s24  ;;  %s1720_s30 = scalar_lea.sflag [#allocation12], %s676_s22 }
  0x94   : > { %s1232_s11 = scalar_lea.vmem %s1706_s14, 256  ;;  %s1395_s23 = smov [#allocation11]  }
  0x95   : > { %p1233_p5 = scmp.ne.s32.totalorder %s1706_s14, %s1232_s11  ;;  %s1236_s17 = sshll.u32 %s1395_s23, 4  ;;  %s1237_s17 = int_to_ptr.vmem [resolvable:$false] %s1236_s17 }
  0x96   : > { %p1239_p0 = scmp.lt.s32.totalorder %s1706_s14, %s1237_s17 }
  0x97   : > { %p1234_p7 = pnand %p1233_p5, %p1603_p10 }
  0x99   : > { %p1235_p9 = pneg %p1234_p7 }
 0x11b   : > { %v411_v2 = vpop.xlane.xlu0 %410 }
 0x11c   : > { %v413_v3 = vmul.f32 0.03125, %v411_v2 }
 0x11e   : > { %v414_v4 = vsub.f32 %v405_v0, %v413_v3 }
 0x120   : > { %v415_v5 = vmul.f32 %v414_v4, %v414_v4 }
 0x122   : > { %v416_v6 = vsel %vm408_vm0, %v415_v5, 0.0 }
 0x123   : > { %417 = vadd.xlane.f32.xlu0 %v416_v6 }
 0x1b0   : > { %v418_v12 = vpop.xlane.xlu0 %417 }
 0x1b1   : > { %v419_v13 = vmul.f32 0.03125, %v418_v12 }
 0x1b3   : > { %v420_v14 = vadd.f32 1e-05, %v419_v13 }
 0x1b5   : > { %1116 = vrsqrt.f32 %v420_v14 }
 0x1bf   : > { %v1117_v15 = vpop.eup %1116 }
 0x1c0   : > { %v422_v17 = vmul.f32 %v1117_v15, %v414_v4 }
 0x1c2   : > { %v429_v19 = vmul.f32 %v925_v16, %v422_v17 }
 0x1c4   : > { %v436_v20 = vadd.f32 %v926_v18, %v429_v19 }
 0x1c6   : > { %v437_v22 = vpack.c.bf16 %v436_v20, %v436_v20 }
 0x1c8   : > { %979 = vmatmul.mubr.msk.bf16.vlgmr.msra.gmra.mrb[0].mxu0 %vm408_vm0, %v437_v22  ;;  %987 = vmatmul.mubr.msk.bf16.vlgmr.msra.gmra.mrb[0].mxu1 %vm408_vm0, %v437_v22 }
 0x1c9   : > { %991 = vmatpush3.bf16.msra.mxu0 %v1114_v21  ;;  %994 = vmatprep.mubr.msk.bf16.mxu0 %vm1391_vm1, %v1390_v9 }
 0x1ca   : > { %992 = vmatprep.subr.bf16.mxu0 %v1390_v9 }
 0x1cd   : > { %993 = vmatpush3.bf16.msra.mxu0 %v1115_v23 }
 0x1d0   : > { %995 = vmatmul.mubr.msk.bf16.vlgmr.msra.gmra.mrb[4].mxu0 %vm408_vm0, %v437_v22 }
 0x29b   : > { %v491_v24 = vpop.f32.mrb[0].mxu0  ;;  %v548_v25 = vpop.f32.mrb[0].mxu1 }
 0x29c   : > { %v497_v26 = vmul.f32 0.35355338, %v491_v24  ;;  %v611_v27 = vpack.c.bf16 %v548_v25, %v548_v25  ;;  %v980_v28 = vpop.f32.mrb[1].mxu0  ;;  %v988_v29 = vpop.f32.mrb[1].mxu1 }
 0x29d   : > { %v494_v30 = vpop.f32.mrb[2].mxu0  ;;  %v551_v31 = vpop.f32.mrb[2].mxu1 }
 0x29e   : > { %v610_v32 = vpack.c.bf16 %v497_v26, %v497_v26  ;;  %615 = vst.msk [vmem:[%s1689_s20] sm:$0xf] %vm613_vm2, %v611_v27  ;;  %661 = vrot.lane.b32.xlu0 %v611_v27, %s1392_s26  ;;  %628 = vrot.lane.b32.xlu1 %v611_v27, %s1393_s27  ;;  %v981_v33 = vpop.f32.mrb[3].mxu0  ;;  %v989_v34 = vpop.f32.mrb[3].mxu1 }
 0x2a0   : > { %614 = vst.msk [vmem:[%s1693_s16] sm:$0xf] %vm613_vm2, %v610_v32 }
 0x2a2   : > { %646 = vrot.lane.b32.xlu1 %v611_v27, %s1394_s21 }
 0x2a3   : > { %v604_v35 = vpop.f32.mrb[4].mxu0 }
 0x2a4   : > { %v612_v36 = vpack.c.bf16 %v604_v35, %v604_v35  ;;  %v996_v37 = vpop.f32.mrb[5].mxu0 }
 0x2a5   : > { %v607_v38 = vpop.f32.mrb[6].mxu0 }
 0x2a6   : > { %616 = vst.msk [vmem:[%s1697_s12] sm:$0xf] %vm613_vm2, %v612_v36  ;;  %620 = vrot.lane.b32.xlu1 %v610_v32, %s1393_s27  ;;  %v997_v39 = vpop.f32.mrb[7].mxu0 }
 0x2aa   : > { %641 = vrot.lane.b32.xlu1 %v610_v32, %s1394_s21 }
 0x2ae   : > { %656 = vrot.lane.b32.xlu1 %v610_v32, %s1392_s26 }
 0x2b2   : > { %636 = vrot.lane.b32.xlu1 %v612_v36, %s1393_s27 }
 0x2b6   : > { %651 = vrot.lane.b32.xlu1 %v612_v36, %s1394_s21 }
 0x2ba   : > { %666 = vrot.lane.b32.xlu1 %v612_v36, %s1392_s26  ;;  %s1238_s26 = scalar_lea.vmem %s1237_s17, 512 }
 0x2bb   : > { %p1240_p2 = scmp.lt.s32.totalorder %s1238_s26, %s1232_s11 }
 0x2bd   : > { %p1241_p4 = por %p1240_p2, %p1239_p0 }
 0x2bf   : > { %p1242_p8 = pnand %p1241_p4, %p1235_p9 }
 0x310   : > { %v662_v40 = vpop.permute.xlu0 %661  ;;  %v629_v41 = vpop.permute.xlu1 %628 }
 0x311   : > { %946 = vst.msk [vmem:[%s1689_s20 + $0xc] sm:$0xf] %vm613_vm2, %v662_v40  ;;  %939 = vst.msk [vmem:[%s1689_s20 + $0x4] sm:$0xf] %vm613_vm2, %v629_v41 }
 0x314   : > { %v647_v42 = vpop.permute.xlu1 %646 }
 0x315   : > { %943 = vst.msk [vmem:[%s1689_s20 + $0x8] sm:$0xf] %vm613_vm2, %v647_v42 }
 0x316   : > { %1245 = shalt.err (!%p1242_p8)
}
 0x317   : > { %s1246_s20 = scalar_lea.hbm %s1716_s19, 256  ;;  %s1250_s22 = scalar_lea.hbm %s1861_s7, 512 }
 0x318   : > { %p1247_p1 = scmp.ne.s32.totalorder %s1716_s19, %s1246_s20  ;;  %p1251_p11 = scmp.lt.u32.totalorder %s1716_s19, %s1861_s7 }
 0x319   : > { %p1252_p6 = scmp.lt.u32.totalorder %s1250_s22, %s1246_s20  ;;  %p1254_p5 = scmp.lt.u32.totalorder %s1246_s20, %s1716_s19 }
 0x31a   : > { %p1248_p12 = pnand %p1247_p1, %p1603_p10 }
 0x31b   : > { %p1253_p3 = por %p1252_p6, %p1251_p11 }
 0x31c   : > { %p1249_p13 = pneg %p1248_p12 }
 0x31d   : > { %p1255_p7 = por %p1254_p5, %p1253_p3 }
 0x31f   : > { %p1256_p9 = pnand %p1255_p7, %p1249_p13 }
 0x321   : > { %1259 = shalt.err (!%p1256_p9)
}
 0x322   : > { %s1871_s11 = smov 64   ;;  %s1397_s23 = smov 4   ;;  %v621_v43 = vpop.permute.xlu1 %620 }
 0x323   : > { %1013 = dma.vmem_to_hbm [thread:$0]  (%p1603_p10), %s1706_s14, 256, %s1716_s19, %s1720_s30, %s1871_s11, %s1871_s11, %s1397_s23  }
 0x324   : > { %937 = vst.msk [vmem:[%s1693_s16 + $0x4] sm:$0xf] %vm613_vm2, %v621_v43  ;;  %s696_s17 = sshll.u32 %s1693_s16, 4  ;;  %s1891_s27 = sld [smem:[#allocation21_spill]]  ;;  %s1752_s17 = int_to_ptr.vmem [resolvable:$true] %s696_s17 }
 0x325   : > { %s672_s14 = scalar_lea.sflag [#allocation4], %s1658_s6  ;;  %s1260_s19 = scalar_lea.vmem %s1752_s17, 256 }
 0x326   : > { %v642_v44 = vpop.permute.xlu1 %641  ;;  %p1261_p0 = scmp.ne.s32.totalorder %s1752_s17, %s1260_s19  ;;  %s1398_s13 = smov [#allocation10]  }
 0x327   : > { %942 = vst.msk [vmem:[%s1693_s16 + $0x8] sm:$0xf] %vm613_vm2, %v642_v44  ;;  %s1264_s15 = sshll.u32 %s1398_s13, 4  ;;  %s1265_s15 = int_to_ptr.vmem [resolvable:$false] %s1264_s15 }
 0x328   : > { %p1262_p2 = pnand %p1261_p0, %p1603_p10  ;;  %s1266_s11 = scalar_lea.vmem %s1265_s15, 512 }
 0x329   : > { %p1267_p8 = scmp.lt.s32.totalorder %s1752_s17, %s1265_s15  ;;  %p1268_p1 = scmp.lt.s32.totalorder %s1266_s11, %s1260_s19 }
 0x32a   : > { %s1892_s21 = smov %s1891_s27  ;;  %s1758_s22 = scalar_lea.hbm %s1891_s27, %s1704_s24  ;;  %v657_v45 = vpop.permute.xlu1 %656 }
 0x32b   : > { %945 = vst.msk [vmem:[%s1693_s16 + $0xc] sm:$0xf] %vm613_vm2, %v657_v45  ;;  %p1263_p4 = pneg %p1262_p2  ;;  %p1269_p12 = por %p1268_p1, %p1267_p8 }
 0x32d   : > { %p1270_p13 = pnand %p1269_p12, %p1263_p4 }
 0x32f   : > { %1273 = shalt.err (!%p1270_p13)
}
 0x330   : > { %s1274_s16 = scalar_lea.hbm %s1758_s22, 256  ;;  %s1278_s27 = scalar_lea.hbm %s1892_s21, 512 }
 0x331   : > { %p1275_p11 = scmp.ne.s32.totalorder %s1758_s22, %s1274_s16  ;;  %p1279_p5 = scmp.lt.u32.totalorder %s1758_s22, %s1892_s21 }
 0x332   : > { %p1280_p7 = scmp.lt.u32.totalorder %s1278_s27, %s1274_s16  ;;  %p1282_p0 = scmp.lt.u32.totalorder %s1274_s16, %s1758_s22 }
 0x333   : > { %p1276_p6 = pnand %p1275_p11, %p1603_p10 }
 0x334   : > { %p1281_p9 = por %p1280_p7, %p1279_p5 }
 0x335   : > { %p1277_p3 = pneg %p1276_p6 }
 0x336   : > { %p1283_p2 = por %p1282_p0, %p1281_p9 }
 0x338   : > { %p1284_p4 = pnand %p1283_p2, %p1277_p3 }
 0x33a   : > { %1287 = shalt.err (!%p1284_p4)
}
 0x33b   : > { %s1893_s11 = smov 64   ;;  %v637_v46 = vpop.permute.xlu1 %636  ;;  %s730_s19 = sshll.u32 %s1697_s12, 4  ;;  %s1794_s19 = int_to_ptr.vmem [resolvable:$true] %s730_s19 }
 0x33c   : > { %1012 = dma.vmem_to_hbm [thread:$0]  (%p1603_p10), %s1752_s17, 256, %s1758_s22, %s672_s14, %s1893_s11, %s1893_s11, %s1397_s23  }
 0x33d   : > { %941 = vst.msk [vmem:[%s1697_s12 + $0x4] sm:$0xf] %vm613_vm2, %v637_v46  ;;  %s1894_s26 = sld [smem:[#allocation22_spill]]  ;;  %s1288_s17 = scalar_lea.vmem %s1794_s19, 256 }
 0x33e   : > { %p1289_p8 = scmp.ne.s32.totalorder %s1794_s19, %s1288_s17  ;;  %s1399_s22 = smov [#allocation13]  }
 0x33f   : > { %v652_v47 = vpop.permute.xlu1 %651  ;;  %s1292_s14 = sshll.u32 %s1399_s22, 4  ;;  %s1293_s14 = int_to_ptr.vmem [resolvable:$false] %s1292_s14 }
 0x340   : > { %944 = vst.msk [vmem:[%s1697_s12 + $0x8] sm:$0xf] %vm613_vm2, %v652_v47  ;;  %p1290_p1 = pnand %p1289_p8, %p1603_p10  ;;  %s1294_s27 = scalar_lea.vmem %s1293_s14, 512 }
 0x341   : > { %p1295_p13 = scmp.lt.s32.totalorder %s1794_s19, %s1293_s14  ;;  %p1296_p11 = scmp.lt.s32.totalorder %s1294_s27, %s1288_s17 }
 0x342   : > { %p1291_p12 = pneg %p1290_p1 }
 0x343   : > { %s1800_s20 = scalar_lea.hbm %s1894_s26, %s1704_s24  ;;  %v667_v48 = vpop.permute.xlu1 %666  ;;  %p1297_p6 = por %p1296_p11, %p1295_p13 }
 0x344   : > { %947 = vst.msk [vmem:[%s1697_s12 + $0xc] sm:$0xf] %vm613_vm2, %v667_v48 }
 0x345   : > { %p1298_p3 = pnand %p1297_p6, %p1291_p12 }
 0x347   : > { %1301 = shalt.err (!%p1298_p3)
}
 0x348   : > { %s1302_s12 = scalar_lea.hbm %s1800_s20, 256  ;;  %s1306_s15 = scalar_lea.hbm %s1894_s26, 512 }
 0x349   : > { %p1303_p5 = scmp.ne.s32.totalorder %s1800_s20, %s1302_s12  ;;  %p1307_p0 = scmp.lt.u32.totalorder %s1800_s20, %s1894_s26 }
 0x34a   : > { %p1308_p2 = scmp.lt.u32.totalorder %s1306_s15, %s1302_s12  ;;  %p1310_p8 = scmp.lt.u32.totalorder %s1302_s12, %s1800_s20 }
 0x34b   : > { %p1304_p7 = pnand %p1303_p5, %p1603_p10 }
 0x34c   : > { %p1309_p4 = por %p1308_p2, %p1307_p0 }
 0x34d   : > { %p1305_p9 = pneg %p1304_p7 }
 0x34e   : > { %p1311_p1 = por %p1310_p8, %p1309_p4 }
 0x350   : > { %p1312_p12 = pnand %p1311_p1, %p1305_p9 }
 0x352   : > { %1315 = shalt.err (!%p1312_p12)
}
 0x353   : > { %1014 = dma.vmem_to_hbm [thread:$0]  (%p1603_p10), %s1794_s19, 256, %s1800_s20, %s1720_s30, %s1893_s11, %s1893_s11, %s1397_s23  }
 0x354 PF: > { %s1895_s17 = sld [smem:[#allocation19_spill]]  ;;  %s1896_s22 = sld [smem:[#allocation20_spill]] }
 0x355   : > { %p1898_p11 = scmp.ge.s32.totalorder %s1382_s10, 2 }
 0x35a   : > { %s745_s14 = sand.u32 1, %s1895_s17   ;;  %p1897_p13 = scmp.ne.s32.totalorder %s1896_s22, 0 }
 0x35b   : > { %s746_s27 = scalar_lea.sflag [#allocation4], %s745_s14 }
 0x35c   : > { %p1033_p6 = pnand %p1898_p11, %p1897_p13 }
 0x35e   : > { %1353 = dma.done.wait (!%p1033_p6), %s746_s27, 256  }
 0x35f   : > { %1355 = vsyncadd (!%p1033_p6), %s746_s27, 4294967040  ;;  %s1899_s8 = sadd.s32 4294967294, %s1382_s10  }
 0x360   : > { %s754_s12 = sand.u32 1, %s1899_s8  }
 0x361   : > { %s755_s24 = scalar_lea.sflag [#allocation12], %s754_s12 }
 0x362   : > { %1357 = dma.done.wait (!%p1033_p6), %s755_s24, 512  }
 0x363   : > { %1359 = vsyncadd (!%p1033_p6), %s755_s24, 4294966784  ;;  %s30_s10 = sadd.s32 1, %s1382_s10   ;;  %s1900_s27 = smov %s1366_s28 }
 0x364   : > { %p27_p10 = scmp.ge.s32.totalorder %s30_s10, 4   ;;  %s1901_s28 = smov %s1370_s29 }
 0x365   : > { %s1902_s29 = smov %s1615_s25  ;;  %s1903_s30 = smov %s1378_s9 }
 0x366   : > { %s1904_s9 = smov %s1906_s18  ;;  %29 = sbr.rel (!%p27_p10) target bundleno = 13 (0xd), region = 142 }
 0x36d   :  { %769 = vsyncpa [#allocation3], 1 }
 0x36e   :  { %771 = vsyncpa [#allocation3 + $0x1], 1 }
 0x36f   :  { %772 = vsyncpa [#allocation6], 1 }
 0x370   :  { %773 = vsyncpa [#allocation9], 1 }
 0x371   :  { %774 = vsyncpa [#allocation4], 1 }
 0x372   :  { %776 = vsyncpa [#allocation4 + $0x1], 1 }
 0x373   :  { %777 = vsyncpa [#allocation12], 1 }
 0x374   :  { %779 = vsyncpa [#allocation12 + $0x1], 1 }

</bundles_post_ra>
